<compile_context>
chip_gen: v7x
topology: tpu7x:2x2x1
jax: 0.10.0
libtpu: 0.0.40
codegen_flags: <defaults>
</compile_context>

<pallas_src>
import jax
import jax.numpy as jnp
from jax.experimental import pallas as pl
from jax.experimental.pallas import tpu as pltpu


def _postprocess_kernel(logits_ref, bbox_ref, ts_ref,
                        scores_ref, labels_ref, boxes_ref):
    # logits_ref: (Bb, Q, C)  bbox_ref: (Bb, Q, 4)  ts_ref: (Bb, 1, 2) [img_h, img_w]
    # scores_ref: (Bb, 1, Q) f32  labels_ref: (Bb, 1, Q) i32  boxes_ref: (Bb, Q, 4) f32
    logits_raw = logits_ref[...]                               # native dtype (bf16 ok)
    Bb, Q, C = logits_raw.shape

    # ---- labels: argmax over valid classes (softmax is monotone -> same argmax) ----
    col = jax.lax.broadcasted_iota(jnp.int32, (Bb, Q, C), 2)
    neg_inf = jnp.array(-jnp.inf, dtype=logits_raw.dtype)
    masked = jnp.where(col < C - 1, logits_raw, neg_inf)       # exclude "no object"
    best_raw = jnp.max(masked, axis=-1, keepdims=True)         # (Bb, Q, 1)
    # first-hit tie-break matches torch .max(-1)
    labels = jnp.min(jnp.where(masked == best_raw, col, C), axis=-1, keepdims=True)
    labels = jnp.minimum(labels, C - 2)                        # guard pathological NaN rows

    # ---- scores: softmax prob of the winning class (f32 math for exp/sum/div) ----
    logits = logits_raw.astype(jnp.float32)
    best = best_raw.astype(jnp.float32)
    # max over all classes == max(best_valid, no-object logit): saves one full reduce
    m = jnp.maximum(best, logits[..., C - 1:C])
    denom = jnp.sum(jnp.exp(logits - m), axis=-1, keepdims=True)
    scores = jnp.exp(best - m) / denom                         # (Bb, Q, 1)

    # lane-dense stores: queries land on the 128 lanes
    scores_ref[...] = scores.reshape(Bb, 1, Q)
    labels_ref[...] = labels.reshape(Bb, 1, Q).astype(jnp.int32)

    # ---- boxes: cxcywh -> xyxy scaled by [img_w, img_h, img_w, img_h] (pure VPU) ----
    bbox = bbox_ref[...].astype(jnp.float32)                   # (Bb, Q, 4)
    ts = ts_ref[...].astype(jnp.float32)                       # (Bb, 1, 2) [h, w]
    scale_wh = jnp.concatenate([ts[..., 1:2], ts[..., 0:1]], axis=-1)   # (Bb, 1, 2) [w, h]
    cxcy = bbox[..., 0:2]
    half = 0.5 * bbox[..., 2:4]
    boxes_ref[:, :, 0:2] = (cxcy - half) * scale_wh
    boxes_ref[:, :, 2:4] = (cxcy + half) * scale_wh


def _grid_policy(B, Q, C, in_itemsize):
    """Pick batch-block size bb from a VMEM budget; even step count on v7x."""
    # per-image VMEM: double-buffered input block + ~6 full (Q, C) f32 temporaries
    per_image = Q * C * (2 * in_itemsize + 6 * 4) + Q * 4 * 16 + 4096
    try:
        vmem_cap = int(pltpu.get_tpu_info().vmem_capacity_bytes)
    except Exception:  # pragma: no cover - off-TPU tracing / older runtimes
        vmem_cap = 128 << 20
    two_tc = vmem_cap <= (64 << 20)            # v7x: 64 MiB per TC, 2 TensorCores
    budget = min(vmem_cap // 2, 24 << 20)      # stay well under scoped-VMEM limit
    bb = max(1, min(B, budget // max(per_image, 1)))
    steps = pl.cdiv(B, bb)
    if two_tc and B >= 2:
        steps = max(steps, 2)
        if steps % 2:
            steps += 1                         # keep step count even for 2 TCs
    bb = pl.cdiv(B, steps)
    steps = pl.cdiv(B, bb)                     # partial tail block is masked by Pallas
    need = bb * per_image + (1 << 20)
    vmem_limit = int(min(max(2 * need, 32 << 20), vmem_cap - (4 << 20)))
    return steps, bb, vmem_limit


def _post_process_arrays(out_logits, out_bbox, target_sizes):
    B, Q, C = out_logits.shape
    steps, bb, vmem_limit = _grid_policy(B, Q, C, out_logits.dtype.itemsize)
    ts3 = target_sizes.reshape(B, 1, 2)        # [img_h, img_w] per image

    scores, labels, boxes = pl.pallas_call(
        _postprocess_kernel,
        out_shape=(jax.ShapeDtypeStruct((B, 1, Q), jnp.float32),
                   jax.ShapeDtypeStruct((B, 1, Q), jnp.int32),
                   jax.ShapeDtypeStruct((B, Q, 4), jnp.float32)),
        grid=(steps,),
        in_specs=[pl.BlockSpec((bb, Q, C), lambda b: (b, 0, 0)),
                  pl.BlockSpec((bb, Q, 4), lambda b: (b, 0, 0)),
                  pl.BlockSpec((bb, 1, 2), lambda b: (b, 0, 0))],
        out_specs=(pl.BlockSpec((bb, 1, Q), lambda b: (b, 0, 0)),
                   pl.BlockSpec((bb, 1, Q), lambda b: (b, 0, 0)),
                   pl.BlockSpec((bb, Q, 4), lambda b: (b, 0, 0))),
        compiler_params=pltpu.CompilerParams(
            dimension_semantics=("parallel",),
            vmem_limit_bytes=vmem_limit),
    )(out_logits, out_bbox, ts3)               # native dtypes, no wrapper-side cast

    return scores[:, 0, :], labels[:, 0, :], boxes


_post_process_jit = jax.jit(_post_process_arrays)


def post_process(out_logits, out_bbox, target_sizes):
    """Same output format as the torch module: list of per-image dicts."""
    scores, labels, boxes = _post_process_jit(out_logits, out_bbox, target_sizes)
    # TODO(synk): torch returns int64 labels and moves boxes via .cpu(); those are
    # host-side concerns, labels are returned here as int32 device arrays.
    return [{'scores': scores[i], 'labels': labels[i], 'boxes': boxes[i]}
            for i in range(out_logits.shape[0])]


def _reference(out_logits, out_bbox, target_sizes):
    prob = jax.nn.softmax(out_logits, axis=-1)
    scores = jnp.max(prob[..., :-1], axis=-1)
    labels = jnp.argmax(prob[..., :-1], axis=-1).astype(jnp.int32)
    cx, cy, w, h = jnp.split(out_bbox, 4, axis=-1)
    boxes = jnp.concatenate([cx - 0.5 * w, cy - 0.5 * h,
                             cx + 0.5 * w, cy + 0.5 * h], axis=-1)
    img_h = target_sizes[:, 0]
    img_w = target_sizes[:, 1]
    scale = jnp.stack([img_w, img_h, img_w, img_h], axis=1)[:, None, :]
    return scores, labels, boxes * scale


if __name__ == "__main__":
    B, Q, C = 2, 16, 32  # batch, num_queries, num_classes + 1 (no-object)
    key = jax.random.PRNGKey(0)
    k1, k2 = jax.random.split(key)
    out_logits = jax.random.normal(k1, (B, Q, C), dtype=jnp.float32)
    out_bbox = jax.random.uniform(k2, (B, Q, 4), dtype=jnp.float32,
                                  minval=0.1, maxval=0.5)
    target_sizes = jnp.array([[480.0, 640.0], [512.0, 384.0]], dtype=jnp.float32)

    got_scores, got_labels, got_boxes = _post_process_jit(out_logits, out_bbox,
                                                          target_sizes)
    jax.block_until_ready((got_scores, got_labels, got_boxes))

    # module-style output (list of dicts), built outside the jitted region
    results = post_process(out_logits, out_bbox, target_sizes)
    jax.block_until_ready(results[0]['boxes'])

    # self-check against pure-JAX reference
    ref_scores, ref_labels, ref_boxes = _reference(out_logits, out_bbox, target_sizes)
    assert jnp.allclose(got_scores, ref_scores, atol=1e-5), "scores mismatch"
    assert jnp.array_equal(got_labels, ref_labels), "labels mismatch"
    assert jnp.allclose(got_boxes, ref_boxes, atol=1e-4), "boxes mismatch"

    print("KERNEL_OK")
</pallas_src>

<mosaic_0001>
module attributes {stable_mosaic.version = 11 : i64} {
  func.func @_postprocess_kernel(%arg0: i32, %arg1: memref<2x16x32xf32, #tpu.memory_space<vmem>>, %arg2: memref<2x16x4xf32, #tpu.memory_space<vmem>>, %arg3: memref<2x1x2xf32, #tpu.memory_space<vmem>>, %arg4: memref<2x1x16xf32, #tpu.memory_space<vmem>>, %arg5: memref<2x1x16xi32, #tpu.memory_space<vmem>>, %arg6: memref<2x16x4xf32, #tpu.memory_space<vmem>>) attributes {dimension_semantics = [#tpu.dimension_semantics<parallel>], iteration_bounds = array<i64: 1>, scalar_prefetch = 0 : i64, scratch_operands = 0 : i64, tpu.core_type = #tpu.core_type<tc>, window_params = [{transform_indices = @transform_0, window_bounds = array<i64: 2, 16, 32>}, {transform_indices = @transform_1, window_bounds = array<i64: 2, 16, 4>}, {transform_indices = @transform_2, window_bounds = array<i64: 2, 1, 2>}, {transform_indices = @transform_3, window_bounds = array<i64: 2, 1, 16>}, {transform_indices = @transform_4, window_bounds = array<i64: 2, 1, 16>}, {transform_indices = @transform_5, window_bounds = array<i64: 2, 16, 4>}]} {
    %c0 = arith.constant 0 : index
    %c0_0 = arith.constant 0 : index
    %c0_1 = arith.constant 0 : index
    %0 = vector.load %arg1[%c0, %c0_0, %c0_1] : memref<2x16x32xf32, #tpu.memory_space<vmem>>, vector<2x16x32xf32>
    %1 = tpu.iota {dimensions = array<i32: 2>} : vector<2x16x32xi32>
    %c31_i32 = arith.constant 31 : i32
    %2 = vector.broadcast %c31_i32 : i32 to vector<2x16x32xi32>
    %3 = arith.cmpi slt, %1, %2 : vector<2x16x32xi32>
    %cst = arith.constant 0xFF800000 : f32
    %4 = vector.broadcast %cst : f32 to vector<2x16x32xf32>
    %5 = arith.select %3, %0, %4 : vector<2x16x32xi1>, vector<2x16x32xf32>
    %cst_2 = arith.constant dense<0xFF800000> : vector<2x16xf32>
    %6 = vector.multi_reduction <maximumf>, %5, %cst_2 [2] : vector<2x16x32xf32> to vector<2x16xf32>
    %7 = vector.shape_cast %6 : vector<2x16xf32> to vector<2x16x1xf32>
    %8 = vector.broadcast %7 : vector<2x16x1xf32> to vector<2x16x32xf32>
    %9 = arith.cmpf oeq, %5, %8 : vector<2x16x32xf32>
    %c32_i32 = arith.constant 32 : i32
    %10 = vector.broadcast %c32_i32 : i32 to vector<2x16x32xi32>
    %11 = arith.select %9, %1, %10 : vector<2x16x32xi1>, vector<2x16x32xi32>
    %cst_3 = arith.constant dense<2147483647> : vector<2x16xi32>
    %12 = vector.multi_reduction <minsi>, %11, %cst_3 [2] : vector<2x16x32xi32> to vector<2x16xi32>
    %13 = vector.shape_cast %12 : vector<2x16xi32> to vector<2x16x1xi32>
    %c30_i32 = arith.constant 30 : i32
    %14 = vector.broadcast %c30_i32 : i32 to vector<2x16x1xi32>
    %15 = arith.minsi %13, %14 : vector<2x16x1xi32>
    %16 = vector.extract_strided_slice %0 {offsets = [0, 0, 31], sizes = [2, 16, 1], strides = [1, 1, 1]} : vector<2x16x32xf32> to vector<2x16x1xf32>
    %17 = arith.maximumf %7, %16 : vector<2x16x1xf32>
    %18 = vector.broadcast %17 : vector<2x16x1xf32> to vector<2x16x32xf32>
    %19 = arith.subf %0, %18 : vector<2x16x32xf32>
    %20 = math.exp %19 : vector<2x16x32xf32>
    %cst_4 = arith.constant dense<0.000000e+00> : vector<2x16xf32>
    %21 = vector.multi_reduction <add>, %20, %cst_4 [2] : vector<2x16x32xf32> to vector<2x16xf32>
    %22 = vector.shape_cast %21 : vector<2x16xf32> to vector<2x16x1xf32>
    %23 = arith.subf %7, %17 : vector<2x16x1xf32>
    %24 = math.exp %23 : vector<2x16x1xf32>
    %25 = arith.divf %24, %22 : vector<2x16x1xf32>
    %26 = vector.shape_cast %25 : vector<2x16x1xf32> to vector<2x1x16xf32>
    %c0_5 = arith.constant 0 : index
    %c0_6 = arith.constant 0 : index
    %c0_7 = arith.constant 0 : index
    %27 = vector.load %arg4[%c0_5, %c0_6, %c0_7] : memref<2x1x16xf32, #tpu.memory_space<vmem>>, vector<2x1x16xf32>
    tpu.vector_store %arg4[%c0_5, %c0_6, %c0_7], %26 {strides = array<i32>} : memref<2x1x16xf32, #tpu.memory_space<vmem>>, vector<2x1x16xf32>,
    %28 = vector.shape_cast %15 : vector<2x16x1xi32> to vector<2x1x16xi32>
    %c0_8 = arith.constant 0 : index
    %c0_9 = arith.constant 0 : index
    %c0_10 = arith.constant 0 : index
    %29 = vector.load %arg5[%c0_8, %c0_9, %c0_10] : memref<2x1x16xi32, #tpu.memory_space<vmem>>, vector<2x1x16xi32>
    tpu.vector_store %arg5[%c0_8, %c0_9, %c0_10], %28 {strides = array<i32>} : memref<2x1x16xi32, #tpu.memory_space<vmem>>, vector<2x1x16xi32>,
    %c0_11 = arith.constant 0 : index
    %c0_12 = arith.constant 0 : index
    %c0_13 = arith.constant 0 : index
    %30 = vector.load %arg2[%c0_11, %c0_12, %c0_13] : memref<2x16x4xf32, #tpu.memory_space<vmem>>, vector<2x16x4xf32>
    %c0_14 = arith.constant 0 : index
    %c0_15 = arith.constant 0 : index
    %c0_16 = arith.constant 0 : index
    %31 = vector.load %arg3[%c0_14, %c0_15, %c0_16] : memref<2x1x2xf32, #tpu.memory_space<vmem>>, vector<2x1x2xf32>
    %32 = vector.extract_strided_slice %31 {offsets = [0, 0, 1], sizes = [2, 1, 1], strides = [1, 1, 1]} : vector<2x1x2xf32> to vector<2x1x1xf32>
    %33 = vector.extract_strided_slice %31 {offsets = [0, 0, 0], sizes = [2, 1, 1], strides = [1, 1, 1]} : vector<2x1x2xf32> to vector<2x1x1xf32>
    %34 = tpu.concatenate %32, %33 in 2 : vector<2x1x1xf32>, vector<2x1x1xf32> -> vector<2x1x2xf32>
    %35 = vector.extract_strided_slice %30 {offsets = [0, 0, 0], sizes = [2, 16, 2], strides = [1, 1, 1]} : vector<2x16x4xf32> to vector<2x16x2xf32>
    %36 = vector.extract_strided_slice %30 {offsets = [0, 0, 2], sizes = [2, 16, 2], strides = [1, 1, 1]} : vector<2x16x4xf32> to vector<2x16x2xf32>
    %cst_17 = arith.constant 5.000000e-01 : f32
    %37 = vector.broadcast %cst_17 : f32 to vector<2x16x2xf32>
    %38 = arith.mulf %37, %36 : vector<2x16x2xf32>
    %39 = arith.subf %35, %38 : vector<2x16x2xf32>
    %40 = vector.broadcast %34 : vector<2x1x2xf32> to vector<2x16x2xf32>
    %41 = arith.mulf %39, %40 : vector<2x16x2xf32>
    %c0_18 = arith.constant 0 : index
    %c0_19 = arith.constant 0 : index
    %c0_20 = arith.constant 0 : index
    %42 = vector.load %arg6[%c0_18, %c0_19, %c0_20] : memref<2x16x4xf32, #tpu.memory_space<vmem>>, vector<2x16x2xf32>
    tpu.vector_store %arg6[%c0_18, %c0_19, %c0_20], %41 {strides = array<i32>} : memref<2x16x4xf32, #tpu.memory_space<vmem>>, vector<2x16x2xf32>,
    %43 = arith.addf %35, %38 : vector<2x16x2xf32>
    %44 = vector.broadcast %34 : vector<2x1x2xf32> to vector<2x16x2xf32>
    %45 = arith.mulf %43, %44 : vector<2x16x2xf32>
    %c0_21 = arith.constant 0 : index
    %c0_22 = arith.constant 0 : index
    %c2 = arith.constant 2 : index
    %46 = vector.load %arg6[%c0_21, %c0_22, %c2] : memref<2x16x4xf32, #tpu.memory_space<vmem>>, vector<2x16x2xf32>
    tpu.vector_store %arg6[%c0_21, %c0_22, %c2], %45 {strides = array<i32>} : memref<2x16x4xf32, #tpu.memory_space<vmem>>, vector<2x16x2xf32>,
    return
  }
  func.func @transform_0(%arg0: i32) -> (i32, i32, i32) {
    %c0_i32 = arith.constant 0 : i32
    %c0_i32_0 = arith.constant 0 : i32
    %c0_i32_1 = arith.constant 0 : i32
    return %arg0, %c0_i32, %c0_i32_0 : i32, i32, i32
  }
  func.func @transform_1(%arg0: i32) -> (i32, i32, i32) {
    %c0_i32 = arith.constant 0 : i32
    %c0_i32_0 = arith.constant 0 : i32
    %c0_i32_1 = arith.constant 0 : i32
    return %arg0, %c0_i32, %c0_i32_0 : i32, i32, i32
  }
  func.func @transform_2(%arg0: i32) -> (i32, i32, i32) {
    %c0_i32 = arith.constant 0 : i32
    %c0_i32_0 = arith.constant 0 : i32
    %c0_i32_1 = arith.constant 0 : i32
    return %arg0, %c0_i32, %c0_i32_0 : i32, i32, i32
  }
  func.func @transform_3(%arg0: i32) -> (i32, i32, i32) {
    %c0_i32 = arith.constant 0 : i32
    %c0_i32_0 = arith.constant 0 : i32
    %c0_i32_1 = arith.constant 0 : i32
    return %arg0, %c0_i32, %c0_i32_0 : i32, i32, i32
  }
  func.func @transform_4(%arg0: i32) -> (i32, i32, i32) {
    %c0_i32 = arith.constant 0 : i32
    %c0_i32_0 = arith.constant 0 : i32
    %c0_i32_1 = arith.constant 0 : i32
    return %arg0, %c0_i32, %c0_i32_0 : i32, i32, i32
  }
  func.func @transform_5(%arg0: i32) -> (i32, i32, i32) {
    %c0_i32 = arith.constant 0 : i32
    %c0_i32_0 = arith.constant 0 : i32
    %c0_i32_1 = arith.constant 0 : i32
    return %arg0, %c0_i32, %c0_i32_0 : i32, i32, i32
  }
}

</mosaic_0001>

<bundles_post_ra>
// kernel: _post_process_arrays.1
= control target key start
LH: loop header
LB: loop body
LE: loop exit
PB: predicated region body
PF: predicated region fallthrough
CT: control target
= control target key end

     0   :  { %11 = vsyncpa [#allocation3], 0  ;;  %v23_v0 = vlaneseq  ;;  %s785_s0 = inlined_call_operand.vmem [shape: f32[2,16,32], index: 0, kind: input, shape index: {}]   ;;  %s786_s1 = inlined_call_operand.vmem [shape: f32[2,16,4], index: 1, kind: input, shape index: {}]   ;;  %s787_s2 = inlined_call_operand.vmem [shape: f32[2,1,2], index: 2, kind: input, shape index: {}]   ;;  %s788_s3 = inlined_call_operand.hbm [shape: f32[2,1,16], index: 3, kind: output, shape index: {0}]   ;;  %s789_s4 = inlined_call_operand.hbm [shape: s32[2,1,16], index: 4, kind: output, shape index: {1}]   ;;  %s790_s5 = inlined_call_operand.vmem [shape: f32[2,16,4], index: 5, kind: output, shape index: {2}]  }
   0x1   :  { %v510_v1 = vld [vmem:[%s785_s0] sm:$0xff] }
   0x2   :  { %12 = vsyncpa [#allocation5], 0  ;;  %v513_v2 = vand.u32 127, %v23_v0  ;;  %v518_v3 = vld [vmem:[%s785_s0 + $0x8] sm:$0xff]  ;;  %v523_v4 = vld [vmem:[%s785_s0 + $0x10] sm:$0xff]  ;;  %vm30_vm0 = vcmask 261120  }
   0x3   :  { %v528_v5 = vld [vmem:[%s785_s0 + $0x18] sm:$0xff]  ;;  %v469_v14 = vmov 31   ;;  %v385_v22 = vld [vmem:[%s787_s2] ss:$0 sm:$0xff]  ;;  %s470_s27 = smov 127   ;;  %v572_v25 = vld [vmem:[%s786_s1 + $0x8] sm:$0xff] }
   0x4   :  { %vm25_vm1 = vcmp.lt.s32.totalorder %v513_v2, 31  ;;  %395 = vset.pattern.permute.xlu0 %v469_v14  ;;  %396 = vset.pattern.permute.xlu1 %v469_v14  ;;  %v386_v24 = vld [vmem:[%s787_s2 + $0x1] ss:$0 sm:$0xff]  ;;  %s471_s7 = smov 1   ;;  %v280_v27 = vmul.f32 0.5, %v572_v25  ;;  %s472_s8 = smov 126  }
   0x5   :  { %v26_v6 = vsel %vm25_vm1, %v510_v1, -inf  ;;  %v27_v7 = vsel %vm25_vm1, %v518_v3, -inf  ;;  %v28_v8 = vsel %vm25_vm1, %v523_v4, -inf  ;;  %v29_v9 = vsel %vm25_vm1, %v528_v5, -inf  ;;  %v588_v29 = vld [vmem:[%s786_s1] sm:$0xff]  ;;  %s473_s21 = smov 2  }
   0x6   :  { %v31_v10 = vsel %vm30_vm0, %v26_v6, -inf  ;;  %v37_v11 = vsel %vm30_vm0, %v28_v8, -inf  ;;  %v34_v12 = vsel %vm30_vm0, %v27_v7, -inf  ;;  %v40_v13 = vsel %vm30_vm0, %v29_v9, -inf  ;;  %s474_s22 = smov [#allocation4]  }
   0x7   :  { %32 = vmax.xlane.f32.xlu0 %v31_v10  ;;  %38 = vmax.xlane.f32.xlu1 %v37_v11  ;;  %v279_v30 = vmul.f32 0.5, %v588_v29  ;;  %v633_v56 = vshrl.u32 %v23_v0, 7  ;;  %vm276_vm6 = vcmask 7168   ;;  %vm315_vm7 = vcmask 15360   ;;  %s366_s23 = sshll.u32 %s474_s22, 4  ;;  %s367_s23 = int_to_ptr.vmem [resolvable:$true] %s366_s23 }
   0x8   :  { %vm212_vm15 = vcmask 130112   ;;  %s421_s24 = scalar_lea.vmem %s367_s23, 32  ;;  %p426_p1 = scmp.lt.s32.totalorder %s367_s23, %s367_s23 }
   0x9   :  { %v305_v61 = vsub.s32 0, %v633_v56  ;;  %p422_p0 = scmp.ne.s32.totalorder %s367_s23, %s421_s24  ;;  %p427_p2 = scmp.lt.s32.totalorder %s421_s24, %s421_s24 }
   0xb   :  { %35 = vmax.xlane.f32.xlu0 %v34_v12  ;;  %41 = vmax.xlane.f32.xlu1 %v40_v13  ;;  %p428_p3 = por %p427_p2, %p426_p1 }
   0xd   :  { %p429_p4 = pnand %p428_p3, %p422_p0 }
  0x94   :  { %v539_v15 = vpop.xlane.xlu0 %32  ;;  %v541_v16 = vpop.xlane.xlu1 %38 }
  0x95   :  { %v545_v17 = vmax.f32 %v539_v15, %v510_v1  ;;  %v549_v18 = vmax.f32 %v541_v16, %v523_v4  ;;  %vm43_vm3 = vcmp.eq.f32.partialorder %v26_v6, %v539_v15  ;;  %vm45_vm4 = vcmp.eq.f32.partialorder %v28_v8, %v541_v16 }
  0x96   :  { %v47_v35 = vsel %vm43_vm3, %v513_v2, 32  ;;  %v49_v37 = vsel %vm45_vm4, %v513_v2, 32 }
  0x97   :  { %v167_v19 = vsub.f32 %v539_v15, %v545_v17  ;;  %125 = vperm.xlu0 %395, %v545_v17   ;;  %v169_v20 = vsub.f32 %v541_v16, %v549_v18  ;;  %v606_v36 = vsel %vm30_vm0, %v47_v35, 2147483647  ;;  %v612_v39 = vsel %vm30_vm0, %v49_v37, 2147483647 }
  0x98   :  { %v556_v21 = vpop.xlane.xlu0 %35  ;;  %v574_v26 = vpop.xlane.xlu1 %41  ;;  %v53_v38 = vshra.s32 %v606_v36, 16  ;;  %v83_v42 = vshra.s32 %v612_v39, 16 }
  0x99   :  { %v563_v23 = vmax.f32 %v556_v21, %v518_v3  ;;  %v581_v28 = vmax.f32 %v574_v26, %v528_v5  ;;  %vm44_vm2 = vcmp.eq.f32.partialorder %v27_v7, %v556_v21  ;;  %vm46_vm5 = vcmp.eq.f32.partialorder %v29_v9, %v574_v26 }
  0x9a   :  { %v48_v31 = vsel %vm44_vm2, %v513_v2, 32  ;;  %v50_v40 = vsel %vm46_vm5, %v513_v2, 32  ;;  %v615_v41 = vcvt.s32.f32 %v53_v38  ;;  %v622_v44 = vcvt.s32.f32 %v83_v42  ;;  %v669_v38 = vld [vmem:[%s786_s1 + $0x18] sm:$0xff] }
  0x9b   :  { %264 = vrot.lane.b32.xlu0 %v385_v22, %s470_s27  ;;  %130 = vperm.xlu1 %396, %v563_v23   ;;  %v596_v32 = vsel %vm30_vm0, %v48_v31, 2147483647  ;;  %v619_v43 = vsel %vm30_vm0, %v50_v40, 2147483647  ;;  %v282_v42 = vmul.f32 0.5, %v669_v38 }
  0x9c   :  { %v68_v33 = vshra.s32 %v596_v32, 16  ;;  %v98_v45 = vshra.s32 %v619_v43, 16 }
  0x9e   :  { %v599_v34 = vcvt.s32.f32 %v68_v33  ;;  %v626_v46 = vcvt.s32.f32 %v98_v45 }
  0x9f   :  { %272 = vrot.lane.b32.xlu0 %v386_v24, %s471_s7  ;;  %135 = vperm.xlu1 %396, %v549_v18  }
  0xa3   :  { %289 = vrot.lane.b32.xlu0 %v280_v27, %s472_s8  ;;  %140 = vperm.xlu1 %396, %v581_v28  }
  0xa7   :  { %266 = vrot.lane.b32.xlu1 %v386_v24, %s470_s27 }
  0xab   :  { %270 = vrot.lane.b32.xlu1 %v385_v22, %s471_s7 }
  0xaf   :  { %287 = vrot.lane.b32.xlu1 %v279_v30, %s472_s8 }
  0xc2   :  { %71 = vmin.xlane.f32.xlu0 %v599_v34 }
  0xd3   :  { %56 = vmin.xlane.f32.xlu1 %v615_v41 }
  0xd7   :  { %86 = vmin.xlane.f32.xlu1 %v622_v44 }
  0xdb   :  { %101 = vmin.xlane.f32.xlu1 %v626_v46 }
 0x116   :  { %v126_v47 = vpop.permute.xlu0 %125 }
 0x117   :  { %v143_v48 = vsub.f32 %v510_v1, %v126_v47  ;;  %v67_v47 = vand.u32 65535, %v596_v32  ;;  %v97_v32 = vand.u32 65535, %v619_v43  ;;  %v168_v43 = vsub.f32 %v556_v21, %v563_v23 }
 0x119   :  { %v147_v49 = vmul.f32 1.442695, %v143_v48 }
 0x11a   :  { %v131_v50 = vpop.permute.xlu1 %130  ;;  %v265_v53 = vpop.permute.xlu0 %264 }
 0x11b   :  { %397 = vpow2.f32 %v147_v49  ;;  %v144_v51 = vsub.f32 %v518_v3, %v131_v50  ;;  %v82_v49 = vand.u32 65535, %v612_v39  ;;  %v69_v50 = vcvt.s32.f32 %v67_v47 }
 0x11d   :  { %v149_v52 = vmul.f32 1.442695, %v144_v51  ;;  %v52_v51 = vand.u32 65535, %v606_v36  ;;  %v99_v36 = vcvt.s32.f32 %v97_v32 }
 0x11e   :  { %v136_v54 = vpop.permute.xlu1 %135  ;;  %v273_v60 = vpop.permute.xlu0 %272 }
 0x11f   :  { %399 = vpow2.f32 %v149_v52  ;;  %v145_v55 = vsub.f32 %v523_v4, %v136_v54  ;;  %v84_v54 = vcvt.s32.f32 %v82_v49 }
 0x121   :  { %v151_v57 = vmul.f32 1.442695, %v145_v55  ;;  %v54_v55 = vcvt.s32.f32 %v52_v51 }
 0x122   :  { %v141_v58 = vpop.permute.xlu1 %140  ;;  %v290_v7 = vpop.permute.xlu0 %289 }
 0x123   :  { %401 = vpow2.f32 %v151_v57  ;;  %v146_v59 = vsub.f32 %v528_v5, %v141_v58  ;;  %v300_v5 = vsub.f32 %v572_v25, %v290_v7  ;;  %v321_v9 = vadd.f32 %v290_v7, %v572_v25 }
 0x125   :  { %v398_v62 = vpop.eup %397  ;;  %v153_v63 = vmul.f32 1.442695, %v146_v59 }
 0x126   :  { %v155_v1 = vsel %vm30_vm0, %v398_v62, 0.0  ;;  %v267_v3 = vpop.permute.xlu1 %266 }
 0x127   :  { %403 = vpow2.f32 %v153_v63  ;;  %156 = vadd.xlane.f32.xlu1 %v155_v1  ;;  %v278_v4 = vsel %vm276_vm6, %v267_v3, %v273_v60  ;;  %v175_v60 = vmul.f32 1.442695, %v169_v20 }
 0x128   :  { %v639_v0 = vrot.slane %v278_v4, %v305_v61 }
 0x129   :  { %v400_v6 = vpop.eup %399 }
 0x12a   :  { %v158_v8 = vsel %vm30_vm0, %v400_v6, 0.0  ;;  %v271_v10 = vpop.permute.xlu1 %270 }
 0x12b   :  { %159 = vadd.xlane.f32.xlu1 %v158_v8  ;;  %v277_v11 = vsel %vm276_vm6, %v265_v53, %v271_v10 }
 0x12c   :  { %v306_v12 = vrot.slane %v277_v11, %v305_v61 }
 0x12d   :  { %v402_v13 = vpop.eup %401 }
 0x12e   :  { %v161_v14 = vsel %vm30_vm0, %v402_v13, 0.0  ;;  %v288_v22 = vpop.permute.xlu1 %287  ;;  %v646_v24 = vmul.f32 %v321_v9, %v306_v12  ;;  %v312_v27 = vmul.f32 %v306_v12, %v300_v5 }
 0x12f   :  { %162 = vadd.xlane.f32.xlu0 %v161_v14  ;;  %v299_v30 = vsub.f32 %v588_v29, %v288_v22  ;;  %v320_v31 = vadd.f32 %v288_v22, %v588_v29  ;;  %v664_v29 = vld [vmem:[%s786_s1 + $0x10] sm:$0xff] }
 0x130   :  { %317 = vst.msk [vmem:[%s790_s5 + $0x8] sm:$0xff] %vm315_vm7, %v312_v27  ;;  %v281_v40 = vmul.f32 0.5, %v664_v29 }
 0x131   :  { %v404_v25 = vpop.eup %403  ;;  %v311_v33 = vmul.f32 %v306_v12, %v299_v30  ;;  %v654_v35 = vmul.f32 %v320_v31, %v306_v12 }
 0x132   :  { %v164_v37 = vsel %vm30_vm0, %v404_v25, 0.0  ;;  %vm225_vm0 = vcmask 122880  }
 0x133   :  { %165 = vadd.xlane.f32.xlu1 %v164_v37  ;;  %316 = vst.msk [vmem:[%s790_s5] sm:$0xff] %vm315_vm7, %v311_v33 }
 0x144   :  { %291 = vrot.lane.b32.xlu1 %v281_v40, %s472_s8 }
 0x145   :  { %293 = vrot.lane.b32.xlu0 %v282_v42, %s472_s8 }
 0x14f   :  { %v675_v45 = vpop.xlane.xlu0 %71 }
 0x150   :  { %vm73_vm8 = vcmp.eq.f32.partialorder %v599_v34, %v675_v45  ;;  %v78_v22 = vcvt.f32.s32 %v675_v45 }
 0x151   :  { %v74_v52 = vsel %vm73_vm8, %v69_v50, inf }
 0x152   :  { %v79_v25 = vshll.u32 %v78_v22, 16 }
 0x160   :  { %v678_v48 = vpop.xlane.xlu1 %56 }
 0x161   :  { %vm58_vm9 = vcmp.eq.f32.partialorder %v615_v41, %v678_v48  ;;  %v171_v41 = vmul.f32 1.442695, %v167_v19  ;;  %v63_v27 = vcvt.f32.s32 %v678_v48  ;;  %v205_v48 = vsub.s32 %v513_v2, %v633_v56 }
 0x162   :  { %v59_v57 = vsel %vm58_vm9, %v54_v55, inf }
 0x163   :  { %405 = vpow2.f32 %v171_v41 }
 0x164   :  { %v684_v53 = vpop.xlane.xlu1 %86  ;;  %75 = vmin.xlane.f32.xlu0 %v74_v52 }
 0x165   :  { %vm88_vm10 = vcmp.eq.f32.partialorder %v622_v44, %v684_v53  ;;  %v173_v44 = vmul.f32 1.442695, %v168_v43  ;;  %v93_v30 = vcvt.f32.s32 %v684_v53 }
 0x166   :  { %v89_v34 = vsel %vm88_vm10, %v84_v54, inf }
 0x168   :  { %v691_v39 = vpop.xlane.xlu1 %101  ;;  %60 = vmin.xlane.f32.xlu1 %v59_v57  ;;  %90 = vmin.xlane.f32.xlu0 %v89_v34 }
 0x169   :  { %vm103_vm11 = vcmp.eq.f32.partialorder %v626_v46, %v691_v39  ;;  %v170_v46 = vsub.f32 %v574_v26, %v581_v28  ;;  %v108_v42 = vcvt.f32.s32 %v691_v39 }
 0x16a   :  { %v104_v58 = vsel %vm103_vm11, %v99_v36, inf }
 0x16b   :  { %v177_v15 = vmul.f32 1.442695, %v170_v46  ;;  %v109_v53 = vshll.u32 %v108_v42, 16 }
 0x16c   :  { %105 = vmin.xlane.f32.xlu1 %v104_v58 }
 0x16d   :  { %v406_v19 = vpop.eup %405 }
 0x1b4   :  { %v157_v59 = vpop.xlane.xlu1 %156 }
 0x1b5   :  { %407 = vrcp.f32 %v157_v59 }
 0x1b6   :  { %409 = vpow2.f32 %v173_v44 }
 0x1b8   :  { %v160_v61 = vpop.xlane.xlu1 %159 }
 0x1b9   :  { %411 = vrcp.f32 %v160_v61 }
 0x1ba   :  { %413 = vpow2.f32 %v175_v60 }
 0x1bc   :  { %v163_v17 = vpop.xlane.xlu0 %162 }
 0x1bd   :  { %415 = vrcp.f32 %v163_v17 }
 0x1be   :  { %417 = vpow2.f32 %v177_v15 }
 0x1bf   :  { %v408_v21 = vpop.eup %407 }
 0x1c0   :  { %v166_v23 = vpop.xlane.xlu1 %165  ;;  %v294_v62 = vpop.permute.xlu0 %293  ;;  %v180_v63 = vmul.f32 %v408_v21, %v406_v19 }
 0x1c1   :  { %419 = vrcp.f32 %v166_v23  ;;  %v302_v1 = vsub.f32 %v669_v38, %v294_v62  ;;  %v410_v16 = vpop.eup %409  ;;  %v323_v12 = vadd.f32 %v294_v62, %v669_v38  ;;  %v94_v38 = vshll.u32 %v93_v30, 16 }
 0x1c2   :  { %192 = vperm.xlu0 %395, %v180_v63  }
 0x1c3   :  { %v412_v18 = vpop.eup %411  ;;  %v314_v20 = vmul.f32 %v639_v0, %v302_v1  ;;  %v327_v14 = vmul.f32 %v323_v12, %v639_v0 }
 0x1c4   :  { %v292_v26 = vpop.permute.xlu1 %291  ;;  %v182_v28 = vmul.f32 %v412_v18, %v410_v16  ;;  %v414_v4 = vpop.eup %413 }
 0x1c5   :  { %v301_v3 = vsub.f32 %v664_v29, %v292_v26  ;;  %319 = vst.msk [vmem:[%s790_s5 + $0x18] sm:$0xff] %vm315_vm7, %v314_v20  ;;  %v322_v10 = vadd.f32 %v292_v26, %v664_v29  ;;  %v64_v29 = vshll.u32 %v63_v27, 16 }
 0x1c6   :  { %195 = vperm.xlu1 %396, %v182_v28  }
 0x1c7   :  { %v416_v6 = vpop.eup %415  ;;  %v313_v7 = vmul.f32 %v639_v0, %v301_v3  ;;  %v326_v13 = vmul.f32 %v322_v10, %v639_v0 }
 0x1c8   :  { %v184_v8 = vmul.f32 %v416_v6, %v414_v4  ;;  %v418_v5 = vpop.eup %417 }
 0x1c9   :  { %318 = vst.msk [vmem:[%s790_s5 + $0x10] sm:$0xff] %vm315_vm7, %v313_v7 }
 0x1ca   :  { %198 = vperm.xlu1 %396, %v184_v8  }
 0x1cb   :  { %v420_v9 = vpop.eup %419 }
 0x1cc   :  { %v186_v11 = vmul.f32 %v420_v9, %v418_v5 }
 0x1ce   :  { %201 = vperm.xlu0 %395, %v186_v11   ;;  %332 = vrot.lane.b32.xlu1 %v654_v35, %s473_s21  ;;  %v207_v35 = vadd.s32 4294967288, %v513_v2 }
 0x1d0   :  { %v210_v45 = vsub.s32 %v207_v35, %v633_v56 }
 0x1d2   :  { %334 = vrot.lane.b32.xlu0 %v646_v24, %s473_s21  ;;  %336 = vrot.lane.b32.xlu1 %v326_v13, %s473_s21 }
 0x1d6   :  { %338 = vrot.lane.b32.xlu0 %v327_v14, %s473_s21 }
 0x1f1   :  { %v76_v31 = vpop.xlane.xlu0 %75 }
 0x1f2   :  { %v77_v33 = vcvt.f32.s32 %v76_v31 }
 0x1f4   :  { %v80_v37 = vadd.s32 %v79_v25, %v77_v33 }
 0x1f5   :  { %v61_v40 = vpop.xlane.xlu1 %60  ;;  %v91_v24 = vpop.xlane.xlu0 %90 }
 0x1f6   :  { %vm113_vm12 = vcmp.lt.s32.totalorder %v80_v37, 30  ;;  %v62_v0 = vcvt.f32.s32 %v61_v40  ;;  %v92_v47 = vcvt.f32.s32 %v91_v24 }
 0x1f7   :  { %v114_v51 = vsel %vm113_vm12, %v80_v37, 30 }
 0x1f8   :  { %v65_v49 = vadd.s32 %v64_v29, %v62_v0  ;;  %v95_v50 = vadd.s32 %v94_v38, %v92_v47  ;;  %v235_v55 = vrot.slane %v114_v51, %v210_v45 }
 0x1f9   :  { %v106_v52 = vpop.xlane.xlu1 %105 }
 0x1fa   :  { %vm111_vm13 = vcmp.lt.s32.totalorder %v65_v49, 30  ;;  %vm115_vm14 = vcmp.lt.s32.totalorder %v95_v50, 30  ;;  %v107_v54 = vcvt.f32.s32 %v106_v52 }
 0x1fb   :  { %v112_v32 = vsel %vm111_vm13, %v65_v49, 30  ;;  %v116_v39 = vsel %vm115_vm14, %v95_v50, 30 }
 0x1fc   :  { %v231_v34 = vrot.slane %v112_v32, %v205_v48  ;;  %v110_v57 = vadd.s32 %v109_v53, %v107_v54  ;;  %v240_v56 = vrot.slane %v116_v39, %v205_v48 }
 0x1fe   :  { %vm117_vm1 = vcmp.lt.s32.totalorder %v110_v57, 30  ;;  %v236_v36 = vsel %vm212_vm15, %v235_v55, %v231_v34 }
 0x1ff   :  { %v118_v2 = vsel %vm117_vm1, %v110_v57, 30  ;;  %246 = vst.msk [vmem:[#allocation4] sm:$0x1] %vm225_vm0, %v236_v36 }
 0x200   :  { %v244_v58 = vrot.slane %v118_v2, %v210_v45 }
 0x202   :  { %v245_v41 = vsel %vm212_vm15, %v244_v58, %v240_v56 }
 0x203   :  { %247 = vst.msk [vmem:[#allocation4 + $0x1] sm:$0x1] %vm225_vm0, %v245_v41 }
 0x204   :  { %432 = shalt.err (!%p429_p4)
}
 0x205   :  { %s433_s26 = scalar_lea.hbm %s789_s4, 32 }
 0x206   :  { %p434_p5 = scmp.ne.s32.totalorder %s789_s4, %s433_s26  ;;  %p437_p6 = scmp.lt.u32.totalorder %s433_s26, %s789_s4 }
 0x208   :  { %p439_p7 = pnand %p437_p6, %p434_p5 }
 0x20a   :  { %442 = shalt.err (!%p439_p7)
}
 0x20b   :  { %s475_s6 = smov 16   ;;  %vm344_vm2 = vcmask 31760   ;;  %s476_s9 = smov [#allocation2]  }
 0x20c   :  { %372 = dma.vmem_to_hbm [thread:$0]  %s367_s23, 32, %s789_s4, [#allocation5], %s475_s6, %s475_s6, %s471_s7  }
 0x20d   :  { %s354_s10 = sshll.u32 %s476_s9, 4  ;;  %s355_s10 = int_to_ptr.vmem [resolvable:$true] %s354_s10 }
 0x20e   :  { %s443_s16 = scalar_lea.vmem %s355_s10, 32  ;;  %p448_p9 = scmp.lt.s32.totalorder %s355_s10, %s355_s10 }
 0x20f   :  { %p444_p8 = scmp.ne.s32.totalorder %s355_s10, %s443_s16  ;;  %p449_p10 = scmp.lt.s32.totalorder %s443_s16, %s443_s16 }
 0x211   :  { %p450_p11 = por %p449_p10, %p448_p9 }
 0x213   :  { %p451_p12 = pnand %p450_p11, %p444_p8 }
 0x241   :  { %v193_v43 = vpop.permute.xlu0 %192 }
 0x242   :  { %v206_v59 = vrot.slane %v193_v43, %v205_v48 }
 0x245   :  { %v196_v44 = vpop.permute.xlu1 %195 }
 0x246   :  { %v211_v60 = vrot.slane %v196_v44, %v210_v45 }
 0x248   :  { %v213_v46 = vsel %vm212_vm15, %v211_v60, %v206_v59 }
 0x249   :  { %v199_v61 = vpop.permute.xlu1 %198  ;;  %226 = vst.msk [vmem:[#allocation2] sm:$0x1] %vm225_vm0, %v213_v46 }
 0x24a   :  { %v217_v19 = vrot.slane %v199_v61, %v205_v48 }
 0x24d   :  { %v333_v15 = vpop.permute.xlu1 %332  ;;  %v202_v17 = vpop.permute.xlu0 %201 }
 0x24e   :  { %345 = vst.msk [vmem:[%s790_s5] sm:$0xff] %vm344_vm2, %v333_v15  ;;  %v221_v21 = vrot.slane %v202_v17, %v210_v45 }
 0x250   :  { %v222_v23 = vsel %vm212_vm15, %v221_v21, %v217_v19 }
 0x251   :  { %v337_v62 = vpop.permute.xlu1 %336  ;;  %v335_v63 = vpop.permute.xlu0 %334  ;;  %227 = vst.msk [vmem:[#allocation2 + $0x1] sm:$0x1] %vm225_vm0, %v222_v23 }
 0x252   :  { %347 = vst.msk [vmem:[%s790_s5 + $0x10] sm:$0xff] %vm344_vm2, %v337_v62  ;;  %346 = vst.msk [vmem:[%s790_s5 + $0x8] sm:$0xff] %vm344_vm2, %v335_v63 }
 0x253   :  { %454 = shalt.err (!%p451_p12)
}
 0x254   :  { %s455_s18 = scalar_lea.hbm %s788_s3, 32 }
 0x255   :  { %p456_p13 = scmp.ne.s32.totalorder %s788_s3, %s455_s18  ;;  %p459_p0 = scmp.lt.u32.totalorder %s455_s18, %s788_s3 }
 0x257   :  { %p461_p1 = pnand %p459_p0, %p456_p13 }
 0x259   :  { %464 = shalt.err (!%p461_p1)
}
 0x25a   :  { %360 = dma.vmem_to_hbm [thread:$0]  %s355_s10, 32, %s788_s3, [#allocation3], %s475_s6, %s475_s6, %s471_s7   ;;  %v339_v1 = vpop.permute.xlu0 %338 }
 0x25b   :  { %348 = vst.msk [vmem:[%s790_s5 + $0x18] sm:$0xff] %vm344_vm2, %v339_v1 }
 0x25c   :  { %465 = dma.done.wait [#allocation3], 32  }
 0x25d   :  { %466 = vsyncadd [#allocation3], 4294967264 }
 0x25e   :  { %467 = dma.done.wait [#allocation5], 32  }
 0x25f   :  { %468 = vsyncadd [#allocation5], 4294967264 }
 0x260   :  { %383 = vsyncpa [#allocation3], 1 }
 0x261   :  { %384 = vsyncpa [#allocation5], 1 }

</bundles_post_ra>
